<compile_context>
chip_gen: v7x
topology: tpu7x:2x2x1
jax: 0.10.0
libtpu: 0.0.40
codegen_flags: <defaults>
</compile_context>

<pallas_src>
import functools

import jax
import jax.numpy as jnp
from jax.experimental import pallas as pl
from jax.experimental.pallas import tpu as pltpu

LANES = 128


def _tpu_core_split():
    """Return (ncores, is_v7x) for the current TPU generation."""
    try:
        kind = jax.devices()[0].device_kind.lower()
    except Exception:
        return 1, False
    if "v7" in kind:
        return 2, True            # 2 TensorCores per chip
    if ("v4" in kind) or ("v5p" in kind):
        return 2, False           # megacore: "parallel" splits across the 2 TCs
    return 1, False               # v5e / v6e: single TensorCore


def _grid_semantics(ncores, is_v7x):
    arb = getattr(pltpu, "ARBITRARY", "arbitrary")
    if ncores < 2:
        return (arb, arb)
    if is_v7x and hasattr(pltpu, "CORE_PARALLEL"):
        # Only CORE_PARALLEL is guaranteed to shard the leading axis across the
        # two v7x TensorCores (plain "parallel" barely changes codegen).
        return (pltpu.CORE_PARALLEL, arb)
    return (getattr(pltpu, "PARALLEL", "parallel"), arb)


def _bce_partial_kernel(x_ref, y_ref, o_ref, acc_ref, *,
                        rows_valid, tiles_per_core, tile_rows):
    i = pl.program_id(1)

    @pl.when(i == 0)
    def _init():
        acc_ref[...] = jnp.zeros_like(acc_ref)

    x = x_ref[...].astype(jnp.float32)
    y = y_ref[...].astype(jnp.float32)

    # PyTorch clamps each log term at -100 (so 0*log(0) terms are exact zeros).
    log_x = jnp.maximum(jnp.log(x), -100.0)
    log_1mx = jnp.maximum(jnp.log(1.0 - x), -100.0)
    loss = -(y * log_x + (1.0 - y) * log_1mx)

    # NOTE: row0 MUST be computed from the UNCLAMPED block index
    # (c * tiles_per_core + i).  Duplicated trailing grid steps (whose index_map
    # clamps to the last valid block) rely on row0 >= rows_valid to be fully
    # masked out.  Do not "simplify" this to use the clamped index.
    row0 = (pl.program_id(0) * tiles_per_core + i) * tile_rows

    nsub = tile_rows // 8  # whole (8,128) vregs per block

    # Fast path: block fully inside the valid rows -> pure whole-vreg adds.
    @pl.when(row0 + tile_rows <= rows_valid)
    def _full():
        acc_ref[...] += jnp.sum(loss.reshape(nsub, 8, LANES), axis=0)

    # Slow path: block overlaps (or lies past) the array end -> mask bad rows.
    @pl.when(row0 + tile_rows > rows_valid)
    def _ragged():
        row = row0 + jax.lax.broadcasted_iota(jnp.int32, loss.shape, 0)
        masked = jnp.where(row < rows_valid, loss, 0.0)
        acc_ref[...] += jnp.sum(masked.reshape(nsub, 8, LANES), axis=0)

    @pl.when(i == pl.num_programs(1) - 1)
    def _finalize():
        o_ref[...] = acc_ref[...].reshape(o_ref.shape)


@functools.partial(jax.jit, static_argnames=("tile_rows",))
def bce_loss_mean(x, y, tile_rows=4096):
    """Pallas equivalent of F.binary_cross_entropy(x, y, reduction='mean')."""
    total = x.size
    # Multiple of 32 keeps sublane packing legal if callers pass bf16/int8 labels.
    tile_rows = max(32, (int(tile_rows) // 32) * 32)

    flat_x = x.reshape(-1)
    flat_y = y.reshape(-1)

    rows = total // LANES
    rem = total - rows * LANES

    # Tail (< 128 elements): summed in the tiny XLA epilogue.  This replaces the
    # old jnp.pad, which materialized full HBM copies of BOTH inputs on ragged
    # sizes (an extra read+write of every byte for a purely mem-bound kernel).
    tail_sum = jnp.float32(0.0)
    if rem:
        tx = flat_x[rows * LANES:].astype(jnp.float32)
        ty = flat_y[rows * LANES:].astype(jnp.float32)
        tlx = jnp.maximum(jnp.log(tx), -100.0)
        tl1 = jnp.maximum(jnp.log(1.0 - tx), -100.0)
        tail_sum = jnp.sum(-(ty * tlx + (1.0 - ty) * tl1))

    if rows == 0:  # whole input fits in the tail
        return tail_sum / jnp.float32(total)

    x2 = flat_x[: rows * LANES].reshape(rows, LANES)
    y2 = flat_y[: rows * LANES].reshape(rows, LANES)

    # Row tile: multiple of 8 sublanes, capped at tile_rows, just big enough to
    # cover small inputs in a single (possibly over-hanging, masked) block.
    tr = min(tile_rows, max(8, -(-rows // 8) * 8))
    nt = pl.cdiv(rows, tr)                 # row-tile blocks covering the array

    ncores, is_v7x = _tpu_core_split()
    ncores = min(ncores, nt)               # never schedule fully-idle cores
    npc = pl.cdiv(nt, ncores)              # row-tile blocks handled per core
    dim_sem = _grid_semantics(ncores, is_v7x)

    kernel = functools.partial(
        _bce_partial_kernel, rows_valid=rows, tiles_per_core=npc, tile_rows=tr)

    def in_map(c, i):
        # Clamp so duplicated trailing steps re-read a valid block; the kernel
        # masks those entirely via the UNCLAMPED row0 (see kernel NOTE).
        return (jnp.minimum(c * npc + i, nt - 1), 0)

    bytes_accessed = (total * (x.dtype.itemsize + y.dtype.itemsize)
                      + ncores * 8 * LANES * 4)
    cost = pl.CostEstimate(flops=9 * total, transcendentals=2 * total,
                           bytes_accessed=bytes_accessed)

    partials = pl.pallas_call(
        kernel,
        out_shape=jax.ShapeDtypeStruct((ncores, 8, LANES), jnp.float32),
        grid=(ncores, npc),
        in_specs=[
            # TODO(synk): consider pipeline_mode=pl.Buffered(3) on v7x if the
            # profile shows exposed DMA at 3.2 TB/s HBM.
            pl.BlockSpec((tr, LANES), in_map),
            pl.BlockSpec((tr, LANES), in_map),
        ],
        out_specs=pl.BlockSpec((1, 8, LANES), lambda c, i: (c, 0, 0)),
        scratch_shapes=[pltpu.VMEM((8, LANES), jnp.float32)],
        compiler_params=pltpu.CompilerParams(
            dimension_semantics=dim_sem,
            # Above v5e's 16 MiB scoped default; within every generation's VMEM.
            vmem_limit_bytes=32 << 20),
        cost_estimate=cost,
    )(x2, y2)

    return (jnp.sum(partials) + tail_sum) / jnp.float32(total)


class BCELoss:
    """Mirror of the PyTorch module's forward (reduction='mean' only)."""

    def __init__(self, reduction="mean"):
        assert reduction == "mean"  # TODO(synk): 'sum'/'none' reductions not wired up.
        self.reduction = reduction

    def __call__(self, input, label, mask=None, weight=None, name=None):
        # mask/weight are ignored by the reference forward as well.
        return bce_loss_mean(input, label)


def _reference(x, y):
    x = x.astype(jnp.float32)
    y = y.astype(jnp.float32)
    log_x = jnp.maximum(jnp.log(x), -100.0)
    log_1mx = jnp.maximum(jnp.log(1.0 - x), -100.0)
    return jnp.mean(-(y * log_x + (1.0 - y) * log_1mx))


if __name__ == "__main__":
    key = jax.random.PRNGKey(0)
    k1, k2, k3, k4 = jax.random.split(key, 4)

    loss_fn = BCELoss(reduction="mean")

    # Case 1: NCHW shape divisible by 128 (no tail).
    B, C, H, W = 2, 4, 16, 16
    inp = jax.nn.sigmoid(jax.random.normal(k1, (B, C, H, W), dtype=jnp.float32))
    label = (jax.random.uniform(k2, (B, C, H, W)) > 0.5).astype(jnp.float32)
    loss = jax.block_until_ready(loss_fn(inp, label))
    ref = _reference(inp, label)
    assert jnp.allclose(loss, ref, rtol=1e-5, atol=1e-6), (loss, ref)

    # Case 2: odd element count (exercises the tail epilogue + ragged-block mask).
    shape2 = (3, 5, 7, 11)
    inp2 = jax.nn.sigmoid(jax.random.normal(k3, shape2, dtype=jnp.float32))
    label2 = (jax.random.uniform(k4, shape2) > 0.5).astype(jnp.float32)
    loss2 = jax.block_until_ready(loss_fn(inp2, label2))
    ref2 = _reference(inp2, label2)
    assert jnp.allclose(loss2, ref2, rtol=1e-5, atol=1e-6), (loss2, ref2)

    print("KERNEL_OK")
</pallas_src>

<mosaic_0001>
module attributes {stable_mosaic.version = 11 : i64} {
  func.func @_bce_partial_kernel(%arg0: i32, %arg1: i32, %arg2: memref<16x128xf32, #tpu.memory_space<vmem>>, %arg3: memref<16x128xf32, #tpu.memory_space<vmem>>, %arg4: memref<1x8x128xf32, #tpu.memory_space<vmem>>, %arg5: memref<8x128xf32, #tpu.memory_space<vmem>>) attributes {dimension_semantics = [#tpu.dimension_semantics<arbitrary>, #tpu.dimension_semantics<arbitrary>], iteration_bounds = array<i64: 1, 1>, scalar_prefetch = 0 : i64, scratch_operands = 1 : i64, tpu.core_type = #tpu.core_type<tc>, window_params = [{transform_indices = @transform_0, window_bounds = array<i64: 16, 128>}, {transform_indices = @transform_1, window_bounds = array<i64: 16, 128>}, {transform_indices = @transform_2, window_bounds = array<i64: 1, 8, 128>}]} {
    %c0_i32 = arith.constant 0 : i32
    %0 = arith.cmpi eq, %arg1, %c0_i32 : i32
    %1 = arith.extui %0 : i1 to i32
    %c0_i32_0 = arith.constant 0 : i32
    %2 = arith.cmpi ne, %1, %c0_i32_0 : i32
    scf.if %2 {
      %cst_16 = arith.constant 0.000000e+00 : f32
      %34 = vector.broadcast %cst_16 : f32 to vector<8x128xf32>
      %c0_17 = arith.constant 0 : index
      %c0_18 = arith.constant 0 : index
      %35 = vector.load %arg5[%c0_17, %c0_18] : memref<8x128xf32, #tpu.memory_space<vmem>>, vector<8x128xf32>
      tpu.vector_store %arg5[%c0_17, %c0_18], %34 {strides = array<i32>} : memref<8x128xf32, #tpu.memory_space<vmem>>, vector<8x128xf32>,
    } else {
    }
    %c0 = arith.constant 0 : index
    %c0_1 = arith.constant 0 : index
    %3 = vector.load %arg2[%c0, %c0_1] : memref<16x128xf32, #tpu.memory_space<vmem>>, vector<16x128xf32>
    %c0_2 = arith.constant 0 : index
    %c0_3 = arith.constant 0 : index
    %4 = vector.load %arg3[%c0_2, %c0_3] : memref<16x128xf32, #tpu.memory_space<vmem>>, vector<16x128xf32>
    %5 = math.log %3 : vector<16x128xf32>
    %cst = arith.constant -1.000000e+02 : f32
    %6 = vector.broadcast %cst : f32 to vector<16x128xf32>
    %7 = arith.maximumf %5, %6 : vector<16x128xf32>
    %cst_4 = arith.constant 1.000000e+00 : f32
    %8 = vector.broadcast %cst_4 : f32 to vector<16x128xf32>
    %9 = arith.subf %8, %3 : vector<16x128xf32>
    %10 = math.log %9 : vector<16x128xf32>
    %cst_5 = arith.constant -1.000000e+02 : f32
    %11 = vector.broadcast %cst_5 : f32 to vector<16x128xf32>
    %12 = arith.maximumf %10, %11 : vector<16x128xf32>
    %13 = arith.mulf %4, %7 : vector<16x128xf32>
    %cst_6 = arith.constant 1.000000e+00 : f32
    %14 = vector.broadcast %cst_6 : f32 to vector<16x128xf32>
    %15 = arith.subf %14, %4 : vector<16x128xf32>
    %16 = arith.mulf %15, %12 : vector<16x128xf32>
    %17 = arith.addf %13, %16 : vector<16x128xf32>
    %cst_7 = arith.constant 0.000000e+00 : f32
    %18 = vector.broadcast %cst_7 : f32 to vector<16x128xf32>
    %19 = arith.subf %18, %17 : vector<16x128xf32>
    %c1_i32 = arith.constant 1 : i32
    %20 = arith.muli %arg0, %c1_i32 : i32
    %21 = arith.addi %20, %arg1 : i32
    %c16_i32 = arith.constant 16 : i32
    %22 = arith.muli %21, %c16_i32 : i32
    %c16_i32_8 = arith.constant 16 : i32
    %23 = arith.addi %22, %c16_i32_8 : i32
    %c16_i32_9 = arith.constant 16 : i32
    %24 = arith.cmpi sle, %23, %c16_i32_9 : i32
    %25 = arith.extui %24 : i1 to i32
    %c0_i32_10 = arith.constant 0 : i32
    %26 = arith.cmpi ne, %25, %c0_i32_10 : i32
    scf.if %26 {
      %c0_16 = arith.constant 0 : index
      %c0_17 = arith.constant 0 : index
      %34 = vector.load %arg5[%c0_16, %c0_17] : memref<8x128xf32, #tpu.memory_space<vmem>>, vector<8x128xf32>
      %35 = vector.shape_cast %19 : vector<16x128xf32> to vector<2x8x128xf32>
      %cst_18 = arith.constant dense<0.000000e+00> : vector<8x128xf32>
      %36 = vector.multi_reduction <add>, %35, %cst_18 [0] : vector<2x8x128xf32> to vector<8x128xf32>
      %37 = arith.addf %34, %36 : vector<8x128xf32>
      %c0_19 = arith.constant 0 : index
      %c0_20 = arith.constant 0 : index
      %38 = vector.load %arg5[%c0_19, %c0_20] : memref<8x128xf32, #tpu.memory_space<vmem>>, vector<8x128xf32>
      tpu.vector_store %arg5[%c0_19, %c0_20], %37 {strides = array<i32>} : memref<8x128xf32, #tpu.memory_space<vmem>>, vector<8x128xf32>,
    } else {
    }
    %c16_i32_11 = arith.constant 16 : i32
    %27 = arith.addi %22, %c16_i32_11 : i32
    %c16_i32_12 = arith.constant 16 : i32
    %28 = arith.cmpi sgt, %27, %c16_i32_12 : i32
    %29 = arith.extui %28 : i1 to i32
    %c0_i32_13 = arith.constant 0 : i32
    %30 = arith.cmpi ne, %29, %c0_i32_13 : i32
    scf.if %30 {
      %34 = tpu.iota {dimensions = array<i32: 0>} : vector<16x128xi32>
      %35 = vector.broadcast %22 : i32 to vector<16x128xi32>
      %36 = arith.addi %35, %34 : vector<16x128xi32>
      %c16_i32_16 = arith.constant 16 : i32
      %37 = vector.broadcast %c16_i32_16 : i32 to vector<16x128xi32>
      %38 = arith.cmpi slt, %36, %37 : vector<16x128xi32>
      %cst_17 = arith.constant 0.000000e+00 : f32
      %39 = vector.broadcast %cst_17 : f32 to vector<16x128xf32>
      %40 = arith.select %38, %19, %39 : vector<16x128xi1>, vector<16x128xf32>
      %c0_18 = arith.constant 0 : index
      %c0_19 = arith.constant 0 : index
      %41 = vector.load %arg5[%c0_18, %c0_19] : memref<8x128xf32, #tpu.memory_space<vmem>>, vector<8x128xf32>
      %42 = vector.shape_cast %40 : vector<16x128xf32> to vector<2x8x128xf32>
      %cst_20 = arith.constant dense<0.000000e+00> : vector<8x128xf32>
      %43 = vector.multi_reduction <add>, %42, %cst_20 [0] : vector<2x8x128xf32> to vector<8x128xf32>
      %44 = arith.addf %41, %43 : vector<8x128xf32>
      %c0_21 = arith.constant 0 : index
      %c0_22 = arith.constant 0 : index
      %45 = vector.load %arg5[%c0_21, %c0_22] : memref<8x128xf32, #tpu.memory_space<vmem>>, vector<8x128xf32>
      tpu.vector_store %arg5[%c0_21, %c0_22], %44 {strides = array<i32>} : memref<8x128xf32, #tpu.memory_space<vmem>>, vector<8x128xf32>,
    } else {
    }
    %c0_i32_14 = arith.constant 0 : i32
    %31 = arith.cmpi eq, %arg1, %c0_i32_14 : i32
    %32 = arith.extui %31 : i1 to i32
    %c0_i32_15 = arith.constant 0 : i32
    %33 = arith.cmpi ne, %32, %c0_i32_15 : i32
    scf.if %33 {
      %c0_16 = arith.constant 0 : index
      %c0_17 = arith.constant 0 : index
      %34 = vector.load %arg5[%c0_16, %c0_17] : memref<8x128xf32, #tpu.memory_space<vmem>>, vector<8x128xf32>
      %35 = vector.shape_cast %34 : vector<8x128xf32> to vector<1x8x128xf32>
      %c0_18 = arith.constant 0 : index
      %c0_19 = arith.constant 0 : index
      %c0_20 = arith.constant 0 : index
      %36 = vector.load %arg4[%c0_18, %c0_19, %c0_20] : memref<1x8x128xf32, #tpu.memory_space<vmem>>, vector<1x8x128xf32>
      tpu.vector_store %arg4[%c0_18, %c0_19, %c0_20], %35 {strides = array<i32>} : memref<1x8x128xf32, #tpu.memory_space<vmem>>, vector<1x8x128xf32>,
    } else {
    }
    return
  }
  func.func @transform_0(%arg0: i32, %arg1: i32) -> (i32, i32) {
    %c1_i32 = arith.constant 1 : i32
    %0 = arith.muli %arg0, %c1_i32 : i32
    %1 = arith.addi %0, %arg1 : i32
    %c0_i32 = arith.constant 0 : i32
    %2 = arith.minsi %1, %c0_i32 : i32
    %c0_i32_0 = arith.constant 0 : i32
    %c0_i32_1 = arith.constant 0 : i32
    return %2, %c0_i32_0 : i32, i32
  }
  func.func @transform_1(%arg0: i32, %arg1: i32) -> (i32, i32) {
    %c1_i32 = arith.constant 1 : i32
    %0 = arith.muli %arg0, %c1_i32 : i32
    %1 = arith.addi %0, %arg1 : i32
    %c0_i32 = arith.constant 0 : i32
    %2 = arith.minsi %1, %c0_i32 : i32
    %c0_i32_0 = arith.constant 0 : i32
    %c0_i32_1 = arith.constant 0 : i32
    return %2, %c0_i32_0 : i32, i32
  }
  func.func @transform_2(%arg0: i32, %arg1: i32) -> (i32, i32, i32) {
    %c0_i32 = arith.constant 0 : i32
    %c0_i32_0 = arith.constant 0 : i32
    %c0_i32_1 = arith.constant 0 : i32
    return %arg0, %c0_i32, %c0_i32_0 : i32, i32, i32
  }
}

</mosaic_0001>

<bundles_post_ra>
// kernel: bce_loss_mean.1
= control target key start
LH: loop header
LB: loop body
LE: loop exit
PB: predicated region body
PF: predicated region fallthrough
CT: control target
= control target key end

     0   :  { %s196_s0 = inlined_call_operand.vmem [shape: f32[16,128], index: 0, kind: input, shape index: {}]   ;;  %s197_s1 = inlined_call_operand.vmem [shape: f32[16,128], index: 1, kind: input, shape index: {}]   ;;  %s198_s2 = inlined_call_operand.vmem [shape: f32[1,8,128], index: 2, kind: output, shape index: {}]  }
   0x1   :  { %v80_v0 = vld [vmem:[%s196_s0] sm:$0xff]  ;;  %v81_v1 = vld [vmem:[%s196_s0 + $0x8] sm:$0xff] }
   0x2   :  { %158 = vlog2.f32 %v80_v0  ;;  %v90_v2 = vsub.f32 1.0, %v80_v0  ;;  %v91_v3 = vsub.f32 1.0, %v81_v1  ;;  %v82_v5 = vld [vmem:[%s197_s1] sm:$0xff]  ;;  %v83_v7 = vld [vmem:[%s197_s1 + $0x8] sm:$0xff] }
   0x3   :  { %160 = vlog2.f32 %v81_v1  ;;  %v100_v14 = vsub.f32 1.0, %v82_v5  ;;  %v101_v17 = vsub.f32 1.0, %v83_v7 }
   0x4   :  { %162 = vlog2.f32 %v90_v2 }
   0x5   :  { %164 = vlog2.f32 %v91_v3 }
   0xc   :  { %v159_v4 = vpop.eup %158 }
   0xd   :  { %v161_v6 = vpop.eup %160  ;;  %v85_v8 = vmul.f32 0.6931472, %v159_v4 }
   0xe   :  { %v163_v9 = vpop.eup %162  ;;  %v87_v10 = vmul.f32 0.6931472, %v161_v6 }
   0xf   :  { %v165_v11 = vpop.eup %164  ;;  %v88_v12 = vmax.f32 %v85_v8, -100.0  ;;  %v93_v13 = vmul.f32 0.6931472, %v163_v9 }
  0x10   :  { %v89_v15 = vmax.f32 %v87_v10, -100.0  ;;  %v95_v16 = vmul.f32 0.6931472, %v165_v11 }
  0x11   :  { %v96_v18 = vmax.f32 %v93_v13, -100.0  ;;  %v98_v19 = vmul.f32 %v88_v12, %v82_v5 }
  0x12   :  { %v97_v20 = vmax.f32 %v95_v16, -100.0  ;;  %v99_v21 = vmul.f32 %v89_v15, %v83_v7 }
  0x13   :  { %v102_v22 = vmul.f32 %v100_v14, %v96_v18 }
  0x14   :  { %v103_v23 = vmul.f32 %v101_v17, %v97_v20 }
  0x15   :  { %v104_v24 = vadd.f32 %v102_v22, %v98_v19 }
  0x16   :  { %v105_v25 = vadd.f32 %v103_v23, %v99_v21 }
  0x17   :  { %v106_v26 = vsub.f32 0.0, %v104_v24 }
  0x18   :  { %v107_v27 = vsub.f32 0.0, %v105_v25 }
  0x1a   :  { %v116_v28 = vadd.f32 %v107_v27, %v106_v26 }
  0x1c   :  { %141 = vst [vmem:[%s198_s2] sm:$0xff] %v116_v28 }

</bundles_post_ra>
